<compile_context>
chip_gen: v7x
topology: tpu7x:2x2x1
jax: 0.10.0
libtpu: 0.0.40
codegen_flags: <defaults>
</compile_context>

<pallas_src>
import functools

import jax
import jax.numpy as jnp
from jax.experimental import pallas as pl
from jax.experimental.pallas import tpu as pltpu

_LN2 = 0.6931471805599453
_HALF_LN2 = _LN2 / 2.0

_LANE_CANDIDATES = (4096, 2048, 1024, 512, 256, 128)  # lane-dense last dim
_TARGET_BLOCK_ELEMS = 512 * 1024                      # ~2 MiB f32 per buffer
_SUBLANE_MULT = 16                                    # mult. of 8 (f32) & 16 (bf16 packing)


def _round_up(a: int, m: int) -> int:
    return ((a + m - 1) // m) * m


def _halfsoftplus_kernel(x_ref, o_ref, *, compute_dtype):
    # (softplus(2x) - ln2)/2 == max(x,0) + 0.5*log(1 + exp(-2|x|)) - ln2/2
    x = x_ref[...].astype(compute_dtype)
    ax = jnp.abs(x)
    t = 0.5 * jnp.log(1.0 + jnp.exp(-2.0 * ax)) - _HALF_LN2
    o_ref[...] = (jnp.maximum(x, 0.0) + t).astype(o_ref.dtype)


def _pick_compute_dtype(dtype):
    """bf16 in-kernel compute on chips with bf16 VPU/EUP; f32 otherwise."""
    if dtype == jnp.bfloat16:
        try:
            kind = jax.devices()[0].device_kind.lower()
        except Exception:
            kind = ""
        # v5e/v5p and older have no bf16 VPU/EUP -> keep f32 compute there.
        if not any(v in kind for v in ("v2", "v3", "v4", "v5")):
            return jnp.bfloat16
    return jnp.float32


def _choose_layout(n_main: int):
    """Lane-dense 2D view [rows, lane_w] of the 128-aligned prefix + block rows."""
    lane_w = None
    fallback = None
    for cand in _LANE_CANDIDATES:
        if n_main % cand == 0:
            if fallback is None:
                fallback = cand
            if n_main // cand >= 8:        # prefer full (8,128) vreg sublane use
                lane_w = cand
                break
    if lane_w is None:
        lane_w = fallback                  # tiny input: rows < 8
    rows = n_main // lane_w

    target_rows = max(
        _SUBLANE_MULT,
        (_TARGET_BLOCK_ELEMS // lane_w) // _SUBLANE_MULT * _SUBLANE_MULT,
    )
    if rows >= 2 * _SUBLANE_MULT:
        # Ensure >= 2 grid steps so both v7x TensorCores get work.
        half = _round_up((rows + 1) // 2, _SUBLANE_MULT)
        block_rows = min(target_rows, half)          # multiple of 16 -> legal
    else:
        block_rows = rows                            # equals full dim -> legal
    return lane_w, rows, block_rows


def _tail_formula_f32(x):
    xf = x.astype(jnp.float32)
    return (jnp.maximum(xf, 0.0)
            + 0.5 * jnp.log1p(jnp.exp(-2.0 * jnp.abs(xf)))
            - _HALF_LN2)


@jax.jit
def half_softplus(x: jax.Array) -> jax.Array:
    """(softplus(2*x) - ln2) / 2, elementwise, via a Pallas TPU kernel."""
    orig_shape = x.shape
    dtype = x.dtype
    n = x.size
    if n == 0:
        return x

    flat = x.reshape(-1)
    n_main = (n // 128) * 128                       # 128-aligned prefix
    compute_dtype = _pick_compute_dtype(dtype)
    kernel = functools.partial(_halfsoftplus_kernel, compute_dtype=compute_dtype)

    pieces = []
    if n_main > 0:
        lane_w, rows, block_rows = _choose_layout(n_main)
        x2d = flat[:n_main].reshape(rows, lane_w)   # no-op slice when aligned
        grid = (pl.cdiv(rows, block_rows),)
        cost = pl.CostEstimate(
            flops=7 * n_main,                       # abs, mul, add, mul, sub, max, add
            transcendentals=2 * n_main,             # exp + log
            bytes_accessed=2 * n_main * dtype.itemsize,
        )
        out2d = pl.pallas_call(
            kernel,
            out_shape=jax.ShapeDtypeStruct((rows, lane_w), dtype),
            grid_spec=pl.GridSpec(
                grid=grid,
                in_specs=[pl.BlockSpec((block_rows, lane_w), lambda i: (i, 0))],
                out_specs=pl.BlockSpec((block_rows, lane_w), lambda i: (i, 0)),
            ),
            compiler_params=pltpu.CompilerParams(
                dimension_semantics=("parallel",),   # megacore sharding on v7x
            ),
            cost_estimate=cost,
        )(x2d)
        pieces.append(out2d.reshape(-1))

    if n_main < n:
        # <128-element ragged tail: plain jnp in the wrapper (no pad/slice of
        # the full array).
        pieces.append(_tail_formula_f32(flat[n_main:]).astype(dtype))

    out_flat = pieces[0] if len(pieces) == 1 else jnp.concatenate(pieces)
    return out_flat.reshape(orig_shape)


def _reference(x):
    # plain-JAX reference of the PyTorch forward (f32 math)
    return (jax.nn.softplus(2.0 * x.astype(jnp.float32)) - _LN2) / 2.0


if __name__ == "__main__":
    key = jax.random.PRNGKey(0)

    # Primary test: module-consistent NCHW shape.
    x = jax.random.normal(key, (2, 4, 16, 16), dtype=jnp.float32) * 3.0
    y = half_softplus(x)
    jax.block_until_ready(y)
    y_ref = _reference(x)
    assert y.shape == x.shape and y.dtype == x.dtype
    assert jnp.max(jnp.abs(y - y_ref)) < 1e-5

    # Multi-block path (grid >= 2, wide lanes), still small/fast.
    x2 = jax.random.normal(jax.random.PRNGKey(1), (1, 8, 256, 512), dtype=jnp.float32)
    y2 = half_softplus(x2)
    jax.block_until_ready(y2)
    assert jnp.max(jnp.abs(y2 - _reference(x2))) < 1e-5

    # Ragged shape (aligned-prefix kernel + jnp tail path).
    x3 = jax.random.normal(jax.random.PRNGKey(2), (3, 5, 7, 11), dtype=jnp.float32)
    y3 = half_softplus(x3)
    jax.block_until_ready(y3)
    assert jnp.max(jnp.abs(y3 - _reference(x3))) < 1e-5

    # bf16 storage.  Outputs reach |y| ~ 10, so bf16 rounding alone exceeds an
    # absolute 2e-2 bound -> check RELATIVE error instead.
    xb = x.astype(jnp.bfloat16)
    yb = half_softplus(xb)
    jax.block_until_ready(yb)
    assert yb.dtype == jnp.bfloat16
    ref_b = _reference(xb)
    rel_err = jnp.max(jnp.abs(yb.astype(jnp.float32) - ref_b) / (1.0 + jnp.abs(ref_b)))
    assert rel_err < 2e-2

    print("KERNEL_OK")
</pallas_src>

<mosaic_0001>
module attributes {stable_mosaic.version = 11 : i64} {
  func.func @_halfsoftplus_kernel(%arg0: i32, %arg1: memref<8x256xf32, #tpu.memory_space<vmem>>, %arg2: memref<8x256xf32, #tpu.memory_space<vmem>>) attributes {dimension_semantics = [#tpu.dimension_semantics<parallel>], iteration_bounds = array<i64: 1>, scalar_prefetch = 0 : i64, scratch_operands = 0 : i64, tpu.core_type = #tpu.core_type<tc>, window_params = [{transform_indices = @transform_0, window_bounds = array<i64: 8, 256>}, {transform_indices = @transform_1, window_bounds = array<i64: 8, 256>}]} {
    %c0 = arith.constant 0 : index
    %c0_0 = arith.constant 0 : index
    %0 = vector.load %arg1[%c0, %c0_0] : memref<8x256xf32, #tpu.memory_space<vmem>>, vector<8x256xf32>
    %1 = math.absf %0 : vector<8x256xf32>
    %cst = arith.constant -2.000000e+00 : f32
    %2 = vector.broadcast %cst : f32 to vector<8x256xf32>
    %3 = arith.mulf %2, %1 : vector<8x256xf32>
    %4 = math.exp %3 : vector<8x256xf32>
    %cst_1 = arith.constant 1.000000e+00 : f32
    %5 = vector.broadcast %cst_1 : f32 to vector<8x256xf32>
    %6 = arith.addf %5, %4 : vector<8x256xf32>
    %7 = math.log %6 : vector<8x256xf32>
    %cst_2 = arith.constant 5.000000e-01 : f32
    %8 = vector.broadcast %cst_2 : f32 to vector<8x256xf32>
    %9 = arith.mulf %8, %7 : vector<8x256xf32>
    %cst_3 = arith.constant 0.346573591 : f32
    %10 = vector.broadcast %cst_3 : f32 to vector<8x256xf32>
    %11 = arith.subf %9, %10 : vector<8x256xf32>
    %cst_4 = arith.constant 0.000000e+00 : f32
    %12 = vector.broadcast %cst_4 : f32 to vector<8x256xf32>
    %13 = arith.maximumf %0, %12 : vector<8x256xf32>
    %14 = arith.addf %13, %11 : vector<8x256xf32>
    %c0_5 = arith.constant 0 : index
    %c0_6 = arith.constant 0 : index
    %15 = vector.load %arg2[%c0_5, %c0_6] : memref<8x256xf32, #tpu.memory_space<vmem>>, vector<8x256xf32>
    tpu.vector_store %arg2[%c0_5, %c0_6], %14 {strides = array<i32>} : memref<8x256xf32, #tpu.memory_space<vmem>>, vector<8x256xf32>,
    return
  }
  func.func @transform_0(%arg0: i32) -> (i32, i32) {
    %c0_i32 = arith.constant 0 : i32
    %c0_i32_0 = arith.constant 0 : i32
    return %arg0, %c0_i32 : i32, i32
  }
  func.func @transform_1(%arg0: i32) -> (i32, i32) {
    %c0_i32 = arith.constant 0 : i32
    %c0_i32_0 = arith.constant 0 : i32
    return %arg0, %c0_i32 : i32, i32
  }
}

</mosaic_0001>

<bundles_post_ra>
// kernel: half_softplus.1
= control target key start
LH: loop header
LB: loop body
LE: loop exit
PB: predicated region body
PF: predicated region fallthrough
CT: control target
= control target key end

     0   :  { %s70_s0 = inlined_call_operand.vmem [shape: f32[8,256], index: 0, kind: input, shape index: {}]   ;;  %s71_s1 = inlined_call_operand.vmem [shape: f32[8,256], index: 1, kind: output, shape index: {}]  }
   0x1   :  { %v8_v0 = vld [vmem:[%s70_s0] sm:$0xff]  ;;  %v9_v1 = vld [vmem:[%s70_s0 + $0x8] sm:$0xff] }
   0x2   :  { %v10_v2 = vand.u32 2147483647, %v8_v0  ;;  %v11_v3 = vand.u32 2147483647, %v9_v1  ;;  %v28_v17 = vmax.f32 %v8_v0, 0.0  ;;  %v29_v19 = vmax.f32 %v9_v1, 0.0 }
   0x4   :  { %v12_v4 = vmul.f32 -2.0, %v10_v2  ;;  %v13_v5 = vmul.f32 -2.0, %v11_v3 }
   0x6   :  { %v14_v6 = vmul.f32 1.442695, %v12_v4  ;;  %v16_v7 = vmul.f32 1.442695, %v13_v5 }
   0x8   :  { %40 = vpow2.f32 %v14_v6 }
   0x9   :  { %42 = vpow2.f32 %v16_v7 }
  0x12   :  { %v41_v8 = vpop.eup %40 }
  0x13   :  { %v43_v9 = vpop.eup %42  ;;  %v18_v10 = vadd.f32 1.0, %v41_v8 }
  0x14   :  { %v19_v11 = vadd.f32 1.0, %v43_v9 }
  0x15   :  { %44 = vlog2.f32 %v18_v10 }
  0x16   :  { %46 = vlog2.f32 %v19_v11 }
  0x1f   :  { %v45_v12 = vpop.eup %44 }
  0x20   :  { %v47_v13 = vpop.eup %46  ;;  %v21_v14 = vmul.f32 0.6931472, %v45_v12 }
  0x21   :  { %v23_v15 = vmul.f32 0.6931472, %v47_v13 }
  0x22   :  { %v24_v16 = vmul.f32 0.5, %v21_v14 }
  0x23   :  { %v25_v18 = vmul.f32 0.5, %v23_v15 }
  0x24   :  { %v38_v20 = vadd.f32 -0.3465736, %v24_v16 }
  0x25   :  { %v39_v21 = vadd.f32 -0.3465736, %v25_v18 }
  0x26   :  { %v30_v22 = vadd.f32 %v38_v20, %v28_v17 }
  0x27   :  { %v31_v23 = vadd.f32 %v39_v21, %v29_v19 }
  0x28   :  { %32 = vst [vmem:[%s71_s1] sm:$0xff] %v30_v22 }
  0x29   :  { %33 = vst [vmem:[%s71_s1 + $0x8] sm:$0xff] %v31_v23 }

</bundles_post_ra>
